<compile_context>
chip_gen: v7x
topology: tpu7x:2x2x1
jax: 0.10.0
libtpu: 0.0.40
codegen_flags: <defaults>
</compile_context>

<pallas_src>
import functools

import jax
import jax.numpy as jnp
import numpy as np
from jax import lax
from jax.experimental import pallas as pl
from jax.experimental.pallas import tpu as pltpu


def _attention_kernel(x_ref, wqkv_ref, wout_ref, gamma_ref, beta_ref,
                      out_ref, *maybe_attn, heads, dim_head, eps, with_attn):
    # x_ref     : (Bt, N, D)
    # wqkv_ref  : (D, 3*inner)    (pre-transposed in the wrapper)
    # wout_ref  : (inner, D)      (pre-transposed in the wrapper)
    # gamma/beta: (1, D)
    # out_ref   : (Bt, N, D)
    # attn_ref  : (Bt, H, N, N)   (only if with_attn)
    attn_ref = maybe_attn[0] if with_attn else None

    inner = heads * dim_head
    scale = dim_head ** (-0.5)
    Bt, N, D = x_ref.shape
    cdt = x_ref.dtype                     # MXU compute dtype (bf16 stays bf16)

    # --- LayerNorm over the feature dim (statistics in f32) -----------------
    x = x_ref[...].reshape(Bt * N, D).astype(jnp.float32)
    mean = jnp.mean(x, axis=-1, keepdims=True)
    var = jnp.mean(jnp.square(x - mean), axis=-1, keepdims=True)
    xn = (x - mean) * lax.rsqrt(var + eps)
    xn = xn * gamma_ref[...].astype(jnp.float32) + beta_ref[...].astype(jnp.float32)

    # --- fused QKV projection (lane-dense, no in-kernel transpose) ----------
    qkv = jnp.dot(xn.astype(cdt), wqkv_ref[...],
                  preferred_element_type=jnp.float32)        # (Bt*N, 3*inner)
    qkv = qkv.reshape(Bt, N, 3 * inner)

    wout = wout_ref[...]                                     # (inner, D)

    # --- per-head attention; output projection folded per head --------------
    acc = jnp.zeros((Bt * N, D), jnp.float32)
    for h in range(heads):
        lo = h * dim_head
        qh = (qkv[:, :, lo:lo + dim_head] * scale).astype(cdt)                 # (Bt,N,d)
        kh = qkv[:, :, inner + lo:inner + lo + dim_head].astype(cdt)           # (Bt,N,d)
        vh = qkv[:, :, 2 * inner + lo:2 * inner + lo + dim_head].astype(cdt)   # (Bt,N,d)

        sim = jnp.einsum('bid,bjd->bij', qh, kh,
                         preferred_element_type=jnp.float32)                   # (Bt,N,N)
        sim_max = jnp.max(sim, axis=-1, keepdims=True)
        e = jnp.exp(sim - sim_max)
        denom = jnp.sum(e, axis=-1, keepdims=True)
        attn_h = e * pl.reciprocal(denom, approx=True)        # softmax over j

        if with_attn:
            attn_ref[:, h, :, :] = attn_h.astype(attn_ref.dtype)

        # TODO(synk): attention dropout is identity for dropout=0.0 (module
        # default); stochastic dropout would use pltpu.prng_seed/prng_random_bits.
        out_h = jnp.einsum('bij,bjd->bid', attn_h.astype(cdt), vh,
                           preferred_element_type=jnp.float32)                 # (Bt,N,d)
        acc = acc + jnp.dot(out_h.reshape(Bt * N, dim_head).astype(cdt),
                            wout[lo:lo + dim_head, :],
                            preferred_element_type=jnp.float32)                # (Bt*N,D)

    out_ref[...] = acc.reshape(Bt, N, D).astype(out_ref.dtype)


def _pick_block_b(B, N, D, heads, inner, itemsize):
    """Largest divisor of B keeping the per-step block footprint modest and the
    MXU M dimension (Bt*N) <= 512 rows."""
    best = 1
    for bt in range(1, B + 1):
        if B % bt:
            continue
        rows = bt * N
        blk_bytes = (2 * bt * N * D * itemsize            # x (double-buffered)
                     + 2 * bt * N * D * itemsize          # out
                     + 2 * bt * heads * N * N * itemsize  # attn
                     + bt * N * (3 * inner + D) * 4)      # qkv + acc (f32)
        if rows <= 512 and blk_bytes <= (8 << 20):
            best = bt
    return best


def attention_forward(x, w_qkv, w_out, gamma, beta, *, heads, dim_head,
                      eps=1e-5, return_attn=True, block_b=None):
    B, N, D = x.shape
    inner = heads * dim_head
    assert w_qkv.shape == (3 * inner, D)
    assert w_out.shape == (D, inner)

    # Pre-transpose once so every in-kernel matmul is a straight lane-dense dot.
    w_qkv_t = jnp.transpose(w_qkv)        # (D, 3*inner)
    w_out_t = jnp.transpose(w_out)        # (inner, D)
    gamma2 = gamma.reshape(1, D)
    beta2 = beta.reshape(1, D)

    if block_b is None:
        block_b = _pick_block_b(B, N, D, heads, inner, x.dtype.itemsize)
    assert B % block_b == 0
    grid = (B // block_b,)

    kernel = functools.partial(_attention_kernel, heads=heads, dim_head=dim_head,
                               eps=eps, with_attn=return_attn)

    in_specs = [
        pl.BlockSpec((block_b, N, D), lambda b: (b, 0, 0)),
        pl.BlockSpec((D, 3 * inner), lambda b: (0, 0)),
        pl.BlockSpec((inner, D), lambda b: (0, 0)),
        pl.BlockSpec((1, D), lambda b: (0, 0)),
        pl.BlockSpec((1, D), lambda b: (0, 0)),
    ]
    out_shapes = [jax.ShapeDtypeStruct((B, N, D), x.dtype)]
    out_specs = [pl.BlockSpec((block_b, N, D), lambda b: (b, 0, 0))]
    if return_attn:
        out_shapes.append(jax.ShapeDtypeStruct((B, heads, N, N), x.dtype))
        out_specs.append(pl.BlockSpec((block_b, heads, N, N),
                                      lambda b: (b, 0, 0, 0)))

    results = pl.pallas_call(
        kernel,
        out_shape=tuple(out_shapes),
        grid_spec=pltpu.PrefetchScalarGridSpec(
            num_scalar_prefetch=0,
            grid=grid,
            in_specs=in_specs,
            out_specs=tuple(out_specs),
        ),
        compiler_params=pltpu.CompilerParams(
            dimension_semantics=("parallel",),
            vmem_limit_bytes=32 * 1024 * 1024,
        ),
    )(x, w_qkv_t, w_out_t, gamma2, beta2)

    if return_attn:
        return results[0], results[1]
    return results[0], None


def attention_reference(x, w_qkv, w_out, gamma, beta, *, heads, dim_head, eps=1e-5):
    """Plain-JAX reference mirroring the PyTorch Attention.forward."""
    B, N, D = x.shape
    inner = heads * dim_head
    mean = jnp.mean(x, axis=-1, keepdims=True)
    var = jnp.mean((x - mean) ** 2, axis=-1, keepdims=True)
    xn = (x - mean) / jnp.sqrt(var + eps) * gamma + beta
    qkv = xn @ w_qkv.T
    q, k, v = jnp.split(qkv, 3, axis=-1)

    def to_heads(t):
        return t.reshape(B, N, heads, dim_head).transpose(0, 2, 1, 3)

    q, k, v = map(to_heads, (q, k, v))
    q = q * (dim_head ** -0.5)
    sim = jnp.einsum('bhid,bhjd->bhij', q, k)
    attn = jax.nn.softmax(sim, axis=-1)
    out = jnp.einsum('bhij,bhjd->bhid', attn, v)
    out = out.transpose(0, 2, 1, 3).reshape(B, N, inner)
    out = out @ w_out.T
    return out, attn


if __name__ == "__main__":
    # Small, deterministic config matching the module (dim_head default 16).
    B, N, D = 2, 8, 32
    heads, dim_head = 4, 16
    inner = heads * dim_head

    key = jax.random.PRNGKey(0)
    kx, kqkv, kout, kg, kb = jax.random.split(key, 5)

    x = jax.random.normal(kx, (B, N, D), dtype=jnp.float32)
    w_qkv = jax.random.normal(kqkv, (3 * inner, D), dtype=jnp.float32) * (D ** -0.5)
    w_out = jax.random.normal(kout, (D, inner), dtype=jnp.float32) * (inner ** -0.5)
    gamma = 1.0 + 0.1 * jax.random.normal(kg, (D,), dtype=jnp.float32)
    beta = 0.1 * jax.random.normal(kb, (D,), dtype=jnp.float32)

    out, attn = attention_forward(x, w_qkv, w_out, gamma, beta,
                                  heads=heads, dim_head=dim_head)
    jax.block_until_ready((out, attn))

    out_ref, attn_ref = attention_reference(x, w_qkv, w_out, gamma, beta,
                                            heads=heads, dim_head=dim_head)
    np.testing.assert_allclose(np.asarray(out), np.asarray(out_ref),
                               rtol=1e-2, atol=1e-2)
    np.testing.assert_allclose(np.asarray(attn), np.asarray(attn_ref),
                               rtol=1e-2, atol=1e-2)

    # Fast path: skip materializing the (B,H,N,N) attention matrix.
    out2, _ = attention_forward(x, w_qkv, w_out, gamma, beta,
                                heads=heads, dim_head=dim_head,
                                return_attn=False)
    jax.block_until_ready(out2)
    np.testing.assert_allclose(np.asarray(out2), np.asarray(out_ref),
                               rtol=1e-2, atol=1e-2)

    print("KERNEL_OK")
</pallas_src>

<mosaic_0001>
module attributes {stable_mosaic.version = 11 : i64} {
  func.func @_attention_kernel(%arg0: i32, %arg1: memref<2x8x32xf32, #tpu.memory_space<vmem>>, %arg2: memref<32x192xf32, #tpu.memory_space<vmem>>, %arg3: memref<64x32xf32, #tpu.memory_space<vmem>>, %arg4: memref<1x32xf32, #tpu.memory_space<vmem>>, %arg5: memref<1x32xf32, #tpu.memory_space<vmem>>, %arg6: memref<2x8x32xf32, #tpu.memory_space<vmem>>, %arg7: memref<2x4x8x8xf32, #tpu.memory_space<vmem>>) attributes {dimension_semantics = [#tpu.dimension_semantics<parallel>], iteration_bounds = array<i64: 1>, scalar_prefetch = 0 : i64, scratch_operands = 0 : i64, tpu.core_type = #tpu.core_type<tc>, window_params = [{transform_indices = @transform_0, window_bounds = array<i64: 2, 8, 32>}, {pipeline_mode = #tpu.pipeline_mode<synchronous>, transform_indices = @transform_1, window_bounds = array<i64: 32, 192>}, {pipeline_mode = #tpu.pipeline_mode<synchronous>, transform_indices = @transform_2, window_bounds = array<i64: 64, 32>}, {pipeline_mode = #tpu.pipeline_mode<synchronous>, transform_indices = @transform_3, window_bounds = array<i64: 1, 32>}, {pipeline_mode = #tpu.pipeline_mode<synchronous>, transform_indices = @transform_4, window_bounds = array<i64: 1, 32>}, {transform_indices = @transform_5, window_bounds = array<i64: 2, 8, 32>}, {transform_indices = @transform_6, window_bounds = array<i64: 2, 4, 8, 8>}]} {
    %c0 = arith.constant 0 : index
    %c0_0 = arith.constant 0 : index
    %c0_1 = arith.constant 0 : index
    %0 = vector.load %arg1[%c0, %c0_0, %c0_1] : memref<2x8x32xf32, #tpu.memory_space<vmem>>, vector<2x8x32xf32>
    %1 = vector.shape_cast %0 : vector<2x8x32xf32> to vector<16x32xf32>
    %cst = arith.constant dense<0.000000e+00> : vector<16xf32>
    %2 = vector.multi_reduction <add>, %1, %cst [1] : vector<16x32xf32> to vector<16xf32>
    %3 = vector.shape_cast %2 : vector<16xf32> to vector<16x1xf32>
    %cst_2 = arith.constant 3.200000e+01 : f32
    %4 = vector.broadcast %cst_2 : f32 to vector<16x1xf32>
    %5 = arith.divf %3, %4 : vector<16x1xf32>
    %6 = vector.broadcast %5 : vector<16x1xf32> to vector<16x32xf32>
    %7 = arith.subf %1, %6 : vector<16x32xf32>
    %8 = arith.mulf %7, %7 : vector<16x32xf32>
    %cst_3 = arith.constant dense<0.000000e+00> : vector<16xf32>
    %9 = vector.multi_reduction <add>, %8, %cst_3 [1] : vector<16x32xf32> to vector<16xf32>
    %10 = vector.shape_cast %9 : vector<16xf32> to vector<16x1xf32>
    %cst_4 = arith.constant 3.200000e+01 : f32
    %11 = vector.broadcast %cst_4 : f32 to vector<16x1xf32>
    %12 = arith.divf %10, %11 : vector<16x1xf32>
    %13 = vector.broadcast %5 : vector<16x1xf32> to vector<16x32xf32>
    %14 = arith.subf %1, %13 : vector<16x32xf32>
    %cst_5 = arith.constant 9.99999974E-6 : f32
    %15 = vector.broadcast %cst_5 : f32 to vector<16x1xf32>
    %16 = arith.addf %12, %15 : vector<16x1xf32>
    %17 = math.rsqrt %16 : vector<16x1xf32>
    %18 = vector.broadcast %17 : vector<16x1xf32> to vector<16x32xf32>
    %19 = arith.mulf %14, %18 : vector<16x32xf32>
    %c0_6 = arith.constant 0 : index
    %c0_7 = arith.constant 0 : index
    %20 = vector.load %arg4[%c0_6, %c0_7] : memref<1x32xf32, #tpu.memory_space<vmem>>, vector<1x32xf32>
    %21 = vector.broadcast %20 : vector<1x32xf32> to vector<16x32xf32>
    %22 = arith.mulf %19, %21 : vector<16x32xf32>
    %c0_8 = arith.constant 0 : index
    %c0_9 = arith.constant 0 : index
    %23 = vector.load %arg5[%c0_8, %c0_9] : memref<1x32xf32, #tpu.memory_space<vmem>>, vector<1x32xf32>
    %24 = vector.broadcast %23 : vector<1x32xf32> to vector<16x32xf32>
    %25 = arith.addf %22, %24 : vector<16x32xf32>
    %c0_10 = arith.constant 0 : index
    %c0_11 = arith.constant 0 : index
    %26 = vector.load %arg2[%c0_10, %c0_11] : memref<32x192xf32, #tpu.memory_space<vmem>>, vector<32x192xf32>
    %cst_12 = arith.constant dense<0.000000e+00> : vector<16x192xf32>
    %27 = tpu.matmul %25, %26, %cst_12 {dimension_numbers = #tpu.dot_dimension_numbers<[1], [0], [0], [1], [0, 0, 1, 1], [], []>} : vector<16x32xf32>, vector<32x192xf32>, vector<16x192xf32> -> vector<16x192xf32>
    %28 = vector.shape_cast %27 : vector<16x192xf32> to vector<2x8x192xf32>
    %c0_13 = arith.constant 0 : index
    %c0_14 = arith.constant 0 : index
    %29 = vector.load %arg3[%c0_13, %c0_14] : memref<64x32xf32, #tpu.memory_space<vmem>>, vector<64x32xf32>
    %cst_15 = arith.constant 0.000000e+00 : f32
    %30 = vector.broadcast %cst_15 : f32 to vector<16x32xf32>
    %31 = vector.extract_strided_slice %28 {offsets = [0, 0, 0], sizes = [2, 8, 16], strides = [1, 1, 1]} : vector<2x8x192xf32> to vector<2x8x16xf32>
    %cst_16 = arith.constant 2.500000e-01 : f32
    %32 = vector.broadcast %cst_16 : f32 to vector<2x8x16xf32>
    %33 = arith.mulf %31, %32 : vector<2x8x16xf32>
    %34 = vector.extract_strided_slice %28 {offsets = [0, 0, 64], sizes = [2, 8, 16], strides = [1, 1, 1]} : vector<2x8x192xf32> to vector<2x8x16xf32>
    %35 = vector.extract_strided_slice %28 {offsets = [0, 0, 128], sizes = [2, 8, 16], strides = [1, 1, 1]} : vector<2x8x192xf32> to vector<2x8x16xf32>
    "tpu.trace_start"() <{level = 10 : i32, message = "bid,bjd->bij"}> : () -> ()
    %cst_17 = arith.constant dense<0.000000e+00> : vector<2x8x8xf32>
    %36 = tpu.matmul %33, %34, %cst_17 {dimension_numbers = #tpu.dot_dimension_numbers<[2], [2], [1], [1], [0, 0, 0, 1, 1, 1], [0], [0]>} : vector<2x8x16xf32>, vector<2x8x16xf32>, vector<2x8x8xf32> -> vector<2x8x8xf32>
    "tpu.trace_stop"() : () -> ()
    %cst_18 = arith.constant dense<0xFF800000> : vector<2x8xf32>
    %37 = vector.multi_reduction <maximumf>, %36, %cst_18 [2] : vector<2x8x8xf32> to vector<2x8xf32>
    %38 = vector.shape_cast %37 : vector<2x8xf32> to vector<2x8x1xf32>
    %39 = vector.broadcast %38 : vector<2x8x1xf32> to vector<2x8x8xf32>
    %40 = arith.subf %36, %39 : vector<2x8x8xf32>
    %41 = math.exp %40 : vector<2x8x8xf32>
    %cst_19 = arith.constant dense<0.000000e+00> : vector<2x8xf32>
    %42 = vector.multi_reduction <add>, %41, %cst_19 [2] : vector<2x8x8xf32> to vector<2x8xf32>
    %43 = vector.shape_cast %42 : vector<2x8xf32> to vector<2x8x1xf32>
    %44 = tpu.reciprocal %43 {approx = true} : vector<2x8x1xf32> -> vector<2x8x1xf32>
    %45 = vector.broadcast %44 : vector<2x8x1xf32> to vector<2x8x8xf32>
    %46 = arith.mulf %41, %45 : vector<2x8x8xf32>
    %c0_20 = arith.constant 0 : index
    %c0_21 = arith.constant 0 : index
    %c0_22 = arith.constant 0 : index
    %c0_23 = arith.constant 0 : index
    %47 = vector.load %arg7[%c0_20, %c0_21, %c0_22, %c0_23] : memref<2x4x8x8xf32, #tpu.memory_space<vmem>>, vector<2x1x8x8xf32>
    %48 = vector.shape_cast %47 : vector<2x1x8x8xf32> to vector<2x8x8xf32>
    %49 = vector.shape_cast %46 : vector<2x8x8xf32> to vector<2x1x8x8xf32>
    tpu.vector_store %arg7[%c0_20, %c0_21, %c0_22, %c0_23], %49 {strides = array<i32>} : memref<2x4x8x8xf32, #tpu.memory_space<vmem>>, vector<2x1x8x8xf32>,
    "tpu.trace_start"() <{level = 10 : i32, message = "bij,bjd->bid"}> : () -> ()
    %cst_24 = arith.constant dense<0.000000e+00> : vector<2x8x16xf32>
    %50 = tpu.matmul %46, %35, %cst_24 {dimension_numbers = #tpu.dot_dimension_numbers<[2], [1], [1], [2], [0, 0, 0, 1, 1, 2], [0], [0]>} : vector<2x8x8xf32>, vector<2x8x16xf32>, vector<2x8x16xf32> -> vector<2x8x16xf32>
    "tpu.trace_stop"() : () -> ()
    %51 = vector.shape_cast %50 : vector<2x8x16xf32> to vector<16x16xf32>
    %52 = vector.extract_strided_slice %29 {offsets = [0, 0], sizes = [16, 32], strides = [1, 1]} : vector<64x32xf32> to vector<16x32xf32>
    %cst_25 = arith.constant dense<0.000000e+00> : vector<16x32xf32>
    %53 = tpu.matmul %51, %52, %cst_25 {dimension_numbers = #tpu.dot_dimension_numbers<[1], [0], [0], [1], [0, 0, 1, 1], [], []>} : vector<16x16xf32>, vector<16x32xf32>, vector<16x32xf32> -> vector<16x32xf32>
    %54 = arith.addf %30, %53 : vector<16x32xf32>
    %55 = vector.extract_strided_slice %28 {offsets = [0, 0, 16], sizes = [2, 8, 16], strides = [1, 1, 1]} : vector<2x8x192xf32> to vector<2x8x16xf32>
    %cst_26 = arith.constant 2.500000e-01 : f32
    %56 = vector.broadcast %cst_26 : f32 to vector<2x8x16xf32>
    %57 = arith.mulf %55, %56 : vector<2x8x16xf32>
    %58 = vector.extract_strided_slice %28 {offsets = [0, 0, 80], sizes = [2, 8, 16], strides = [1, 1, 1]} : vector<2x8x192xf32> to vector<2x8x16xf32>
    %59 = vector.extract_strided_slice %28 {offsets = [0, 0, 144], sizes = [2, 8, 16], strides = [1, 1, 1]} : vector<2x8x192xf32> to vector<2x8x16xf32>
    "tpu.trace_start"() <{level = 10 : i32, message = "bid,bjd->bij"}> : () -> ()
    %cst_27 = arith.constant dense<0.000000e+00> : vector<2x8x8xf32>
    %60 = tpu.matmul %57, %58, %cst_27 {dimension_numbers = #tpu.dot_dimension_numbers<[2], [2], [1], [1], [0, 0, 0, 1, 1, 1], [0], [0]>} : vector<2x8x16xf32>, vector<2x8x16xf32>, vector<2x8x8xf32> -> vector<2x8x8xf32>
    "tpu.trace_stop"() : () -> ()
    %cst_28 = arith.constant dense<0xFF800000> : vector<2x8xf32>
    %61 = vector.multi_reduction <maximumf>, %60, %cst_28 [2] : vector<2x8x8xf32> to vector<2x8xf32>
    %62 = vector.shape_cast %61 : vector<2x8xf32> to vector<2x8x1xf32>
    %63 = vector.broadcast %62 : vector<2x8x1xf32> to vector<2x8x8xf32>
    %64 = arith.subf %60, %63 : vector<2x8x8xf32>
    %65 = math.exp %64 : vector<2x8x8xf32>
    %cst_29 = arith.constant dense<0.000000e+00> : vector<2x8xf32>
    %66 = vector.multi_reduction <add>, %65, %cst_29 [2] : vector<2x8x8xf32> to vector<2x8xf32>
    %67 = vector.shape_cast %66 : vector<2x8xf32> to vector<2x8x1xf32>
    %68 = tpu.reciprocal %67 {approx = true} : vector<2x8x1xf32> -> vector<2x8x1xf32>
    %69 = vector.broadcast %68 : vector<2x8x1xf32> to vector<2x8x8xf32>
    %70 = arith.mulf %65, %69 : vector<2x8x8xf32>
    %c0_30 = arith.constant 0 : index
    %c1 = arith.constant 1 : index
    %c0_31 = arith.constant 0 : index
    %c0_32 = arith.constant 0 : index
    %71 = vector.load %arg7[%c0_30, %c1, %c0_31, %c0_32] : memref<2x4x8x8xf32, #tpu.memory_space<vmem>>, vector<2x1x8x8xf32>
    %72 = vector.shape_cast %71 : vector<2x1x8x8xf32> to vector<2x8x8xf32>
    %73 = vector.shape_cast %70 : vector<2x8x8xf32> to vector<2x1x8x8xf32>
    tpu.vector_store %arg7[%c0_30, %c1, %c0_31, %c0_32], %73 {strides = array<i32>} : memref<2x4x8x8xf32, #tpu.memory_space<vmem>>, vector<2x1x8x8xf32>,
    "tpu.trace_start"() <{level = 10 : i32, message = "bij,bjd->bid"}> : () -> ()
    %cst_33 = arith.constant dense<0.000000e+00> : vector<2x8x16xf32>
    %74 = tpu.matmul %70, %59, %cst_33 {dimension_numbers = #tpu.dot_dimension_numbers<[2], [1], [1], [2], [0, 0, 0, 1, 1, 2], [0], [0]>} : vector<2x8x8xf32>, vector<2x8x16xf32>, vector<2x8x16xf32> -> vector<2x8x16xf32>
    "tpu.trace_stop"() : () -> ()
    %75 = vector.shape_cast %74 : vector<2x8x16xf32> to vector<16x16xf32>
    %76 = vector.extract_strided_slice %29 {offsets = [16, 0], sizes = [16, 32], strides = [1, 1]} : vector<64x32xf32> to vector<16x32xf32>
    %cst_34 = arith.constant dense<0.000000e+00> : vector<16x32xf32>
    %77 = tpu.matmul %75, %76, %cst_34 {dimension_numbers = #tpu.dot_dimension_numbers<[1], [0], [0], [1], [0, 0, 1, 1], [], []>} : vector<16x16xf32>, vector<16x32xf32>, vector<16x32xf32> -> vector<16x32xf32>
    %78 = arith.addf %54, %77 : vector<16x32xf32>
    %79 = vector.extract_strided_slice %28 {offsets = [0, 0, 32], sizes = [2, 8, 16], strides = [1, 1, 1]} : vector<2x8x192xf32> to vector<2x8x16xf32>
    %cst_35 = arith.constant 2.500000e-01 : f32
    %80 = vector.broadcast %cst_35 : f32 to vector<2x8x16xf32>
    %81 = arith.mulf %79, %80 : vector<2x8x16xf32>
    %82 = vector.extract_strided_slice %28 {offsets = [0, 0, 96], sizes = [2, 8, 16], strides = [1, 1, 1]} : vector<2x8x192xf32> to vector<2x8x16xf32>
    %83 = vector.extract_strided_slice %28 {offsets = [0, 0, 160], sizes = [2, 8, 16], strides = [1, 1, 1]} : vector<2x8x192xf32> to vector<2x8x16xf32>
    "tpu.trace_start"() <{level = 10 : i32, message = "bid,bjd->bij"}> : () -> ()
    %cst_36 = arith.constant dense<0.000000e+00> : vector<2x8x8xf32>
    %84 = tpu.matmul %81, %82, %cst_36 {dimension_numbers = #tpu.dot_dimension_numbers<[2], [2], [1], [1], [0, 0, 0, 1, 1, 1], [0], [0]>} : vector<2x8x16xf32>, vector<2x8x16xf32>, vector<2x8x8xf32> -> vector<2x8x8xf32>
    "tpu.trace_stop"() : () -> ()
    %cst_37 = arith.constant dense<0xFF800000> : vector<2x8xf32>
    %85 = vector.multi_reduction <maximumf>, %84, %cst_37 [2] : vector<2x8x8xf32> to vector<2x8xf32>
    %86 = vector.shape_cast %85 : vector<2x8xf32> to vector<2x8x1xf32>
    %87 = vector.broadcast %86 : vector<2x8x1xf32> to vector<2x8x8xf32>
    %88 = arith.subf %84, %87 : vector<2x8x8xf32>
    %89 = math.exp %88 : vector<2x8x8xf32>
    %cst_38 = arith.constant dense<0.000000e+00> : vector<2x8xf32>
    %90 = vector.multi_reduction <add>, %89, %cst_38 [2] : vector<2x8x8xf32> to vector<2x8xf32>
    %91 = vector.shape_cast %90 : vector<2x8xf32> to vector<2x8x1xf32>
    %92 = tpu.reciprocal %91 {approx = true} : vector<2x8x1xf32> -> vector<2x8x1xf32>
    %93 = vector.broadcast %92 : vector<2x8x1xf32> to vector<2x8x8xf32>
    %94 = arith.mulf %89, %93 : vector<2x8x8xf32>
    %c0_39 = arith.constant 0 : index
    %c2 = arith.constant 2 : index
    %c0_40 = arith.constant 0 : index
    %c0_41 = arith.constant 0 : index
    %95 = vector.load %arg7[%c0_39, %c2, %c0_40, %c0_41] : memref<2x4x8x8xf32, #tpu.memory_space<vmem>>, vector<2x1x8x8xf32>
    %96 = vector.shape_cast %95 : vector<2x1x8x8xf32> to vector<2x8x8xf32>
    %97 = vector.shape_cast %94 : vector<2x8x8xf32> to vector<2x1x8x8xf32>
    tpu.vector_store %arg7[%c0_39, %c2, %c0_40, %c0_41], %97 {strides = array<i32>} : memref<2x4x8x8xf32, #tpu.memory_space<vmem>>, vector<2x1x8x8xf32>,
    "tpu.trace_start"() <{level = 10 : i32, message = "bij,bjd->bid"}> : () -> ()
    %cst_42 = arith.constant dense<0.000000e+00> : vector<2x8x16xf32>
    %98 = tpu.matmul %94, %83, %cst_42 {dimension_numbers = #tpu.dot_dimension_numbers<[2], [1], [1], [2], [0, 0, 0, 1, 1, 2], [0], [0]>} : vector<2x8x8xf32>, vector<2x8x16xf32>, vector<2x8x16xf32> -> vector<2x8x16xf32>
    "tpu.trace_stop"() : () -> ()
    %99 = vector.shape_cast %98 : vector<2x8x16xf32> to vector<16x16xf32>
    %100 = vector.extract_strided_slice %29 {offsets = [32, 0], sizes = [16, 32], strides = [1, 1]} : vector<64x32xf32> to vector<16x32xf32>
    %cst_43 = arith.constant dense<0.000000e+00> : vector<16x32xf32>
    %101 = tpu.matmul %99, %100, %cst_43 {dimension_numbers = #tpu.dot_dimension_numbers<[1], [0], [0], [1], [0, 0, 1, 1], [], []>} : vector<16x16xf32>, vector<16x32xf32>, vector<16x32xf32> -> vector<16x32xf32>
    %102 = arith.addf %78, %101 : vector<16x32xf32>
    %103 = vector.extract_strided_slice %28 {offsets = [0, 0, 48], sizes = [2, 8, 16], strides = [1, 1, 1]} : vector<2x8x192xf32> to vector<2x8x16xf32>
    %cst_44 = arith.constant 2.500000e-01 : f32
    %104 = vector.broadcast %cst_44 : f32 to vector<2x8x16xf32>
    %105 = arith.mulf %103, %104 : vector<2x8x16xf32>
    %106 = vector.extract_strided_slice %28 {offsets = [0, 0, 112], sizes = [2, 8, 16], strides = [1, 1, 1]} : vector<2x8x192xf32> to vector<2x8x16xf32>
    %107 = vector.extract_strided_slice %28 {offsets = [0, 0, 176], sizes = [2, 8, 16], strides = [1, 1, 1]} : vector<2x8x192xf32> to vector<2x8x16xf32>
    "tpu.trace_start"() <{level = 10 : i32, message = "bid,bjd->bij"}> : () -> ()
    %cst_45 = arith.constant dense<0.000000e+00> : vector<2x8x8xf32>
    %108 = tpu.matmul %105, %106, %cst_45 {dimension_numbers = #tpu.dot_dimension_numbers<[2], [2], [1], [1], [0, 0, 0, 1, 1, 1], [0], [0]>} : vector<2x8x16xf32>, vector<2x8x16xf32>, vector<2x8x8xf32> -> vector<2x8x8xf32>
    "tpu.trace_stop"() : () -> ()
    %cst_46 = arith.constant dense<0xFF800000> : vector<2x8xf32>
    %109 = vector.multi_reduction <maximumf>, %108, %cst_46 [2] : vector<2x8x8xf32> to vector<2x8xf32>
    %110 = vector.shape_cast %109 : vector<2x8xf32> to vector<2x8x1xf32>
    %111 = vector.broadcast %110 : vector<2x8x1xf32> to vector<2x8x8xf32>
    %112 = arith.subf %108, %111 : vector<2x8x8xf32>
    %113 = math.exp %112 : vector<2x8x8xf32>
    %cst_47 = arith.constant dense<0.000000e+00> : vector<2x8xf32>
    %114 = vector.multi_reduction <add>, %113, %cst_47 [2] : vector<2x8x8xf32> to vector<2x8xf32>
    %115 = vector.shape_cast %114 : vector<2x8xf32> to vector<2x8x1xf32>
    %116 = tpu.reciprocal %115 {approx = true} : vector<2x8x1xf32> -> vector<2x8x1xf32>
    %117 = vector.broadcast %116 : vector<2x8x1xf32> to vector<2x8x8xf32>
    %118 = arith.mulf %113, %117 : vector<2x8x8xf32>
    %c0_48 = arith.constant 0 : index
    %c3 = arith.constant 3 : index
    %c0_49 = arith.constant 0 : index
    %c0_50 = arith.constant 0 : index
    %119 = vector.load %arg7[%c0_48, %c3, %c0_49, %c0_50] : memref<2x4x8x8xf32, #tpu.memory_space<vmem>>, vector<2x1x8x8xf32>
    %120 = vector.shape_cast %119 : vector<2x1x8x8xf32> to vector<2x8x8xf32>
    %121 = vector.shape_cast %118 : vector<2x8x8xf32> to vector<2x1x8x8xf32>
    tpu.vector_store %arg7[%c0_48, %c3, %c0_49, %c0_50], %121 {strides = array<i32>} : memref<2x4x8x8xf32, #tpu.memory_space<vmem>>, vector<2x1x8x8xf32>,
    "tpu.trace_start"() <{level = 10 : i32, message = "bij,bjd->bid"}> : () -> ()
    %cst_51 = arith.constant dense<0.000000e+00> : vector<2x8x16xf32>
    %122 = tpu.matmul %118, %107, %cst_51 {dimension_numbers = #tpu.dot_dimension_numbers<[2], [1], [1], [2], [0, 0, 0, 1, 1, 2], [0], [0]>} : vector<2x8x8xf32>, vector<2x8x16xf32>, vector<2x8x16xf32> -> vector<2x8x16xf32>
    "tpu.trace_stop"() : () -> ()
    %123 = vector.shape_cast %122 : vector<2x8x16xf32> to vector<16x16xf32>
    %124 = vector.extract_strided_slice %29 {offsets = [48, 0], sizes = [16, 32], strides = [1, 1]} : vector<64x32xf32> to vector<16x32xf32>
    %cst_52 = arith.constant dense<0.000000e+00> : vector<16x32xf32>
    %125 = tpu.matmul %123, %124, %cst_52 {dimension_numbers = #tpu.dot_dimension_numbers<[1], [0], [0], [1], [0, 0, 1, 1], [], []>} : vector<16x16xf32>, vector<16x32xf32>, vector<16x32xf32> -> vector<16x32xf32>
    %126 = arith.addf %102, %125 : vector<16x32xf32>
    %127 = vector.shape_cast %126 : vector<16x32xf32> to vector<2x8x32xf32>
    %c0_53 = arith.constant 0 : index
    %c0_54 = arith.constant 0 : index
    %c0_55 = arith.constant 0 : index
    %128 = vector.load %arg6[%c0_53, %c0_54, %c0_55] : memref<2x8x32xf32, #tpu.memory_space<vmem>>, vector<2x8x32xf32>
    tpu.vector_store %arg6[%c0_53, %c0_54, %c0_55], %127 {strides = array<i32>} : memref<2x8x32xf32, #tpu.memory_space<vmem>>, vector<2x8x32xf32>,
    return
  }
  func.func @transform_0(%arg0: i32) -> (i32, i32, i32) {
    %c0_i32 = arith.constant 0 : i32
    %c0_i32_0 = arith.constant 0 : i32
    %c0_i32_1 = arith.constant 0 : i32
    return %arg0, %c0_i32, %c0_i32_0 : i32, i32, i32
  }
  func.func @transform_1(%arg0: i32) -> (i32, i32) {
    %c0_i32 = arith.constant 0 : i32
    %c0_i32_0 = arith.constant 0 : i32
    %c0_i32_1 = arith.constant 0 : i32
    return %c0_i32, %c0_i32_0 : i32, i32
  }
  func.func @transform_2(%arg0: i32) -> (i32, i32) {
    %c0_i32 = arith.constant 0 : i32
    %c0_i32_0 = arith.constant 0 : i32
    %c0_i32_1 = arith.constant 0 : i32
    return %c0_i32, %c0_i32_0 : i32, i32
  }
  func.func @transform_3(%arg0: i32) -> (i32, i32) {
    %c0_i32 = arith.constant 0 : i32
    %c0_i32_0 = arith.constant 0 : i32
    %c0_i32_1 = arith.constant 0 : i32
    return %c0_i32, %c0_i32_0 : i32, i32
  }
  func.func @transform_4(%arg0: i32) -> (i32, i32) {
    %c0_i32 = arith.constant 0 : i32
    %c0_i32_0 = arith.constant 0 : i32
    %c0_i32_1 = arith.constant 0 : i32
    return %c0_i32, %c0_i32_0 : i32, i32
  }
  func.func @transform_5(%arg0: i32) -> (i32, i32, i32) {
    %c0_i32 = arith.constant 0 : i32
    %c0_i32_0 = arith.constant 0 : i32
    %c0_i32_1 = arith.constant 0 : i32
    return %arg0, %c0_i32, %c0_i32_0 : i32, i32, i32
  }
  func.func @transform_6(%arg0: i32) -> (i32, i32, i32, i32) {
    %c0_i32 = arith.constant 0 : i32
    %c0_i32_0 = arith.constant 0 : i32
    %c0_i32_1 = arith.constant 0 : i32
    %c0_i32_2 = arith.constant 0 : i32
    return %arg0, %c0_i32, %c0_i32_0, %c0_i32_1 : i32, i32, i32, i32
  }
}

</mosaic_0001>

<bundles_post_ra>
// kernel: tpu_custom_call.1
= control target key start
LH: loop header
LB: loop body
LE: loop exit
PB: predicated region body
PF: predicated region fallthrough
CT: control target
= control target key end

     0   :  { %12 = vsyncpa [#allocation3], 0  ;;  %vm26_vm0 = vcmask 261120   ;;  %s2485_s0 = inlined_call_operand.vmem [shape: f32[2,8,32], index: 0, kind: input, shape index: {}]   ;;  %s2486_s1 = inlined_call_operand.vmem [shape: f32[32,192], index: 1, kind: input, shape index: {}]   ;;  %s2487_s2 = inlined_call_operand.vmem [shape: f32[64,32], index: 2, kind: input, shape index: {}]   ;;  %s2488_s3 = inlined_call_operand.vmem [shape: f32[1,32], index: 3, kind: input, shape index: {}]   ;;  %s2489_s4 = inlined_call_operand.vmem [shape: f32[1,32], index: 4, kind: input, shape index: {}]   ;;  %s2490_s5 = inlined_call_operand.hbm [shape: f32[2,8,32], index: 5, kind: output, shape index: {0}]   ;;  %s2491_s6 = inlined_call_operand.hbm [shape: f32[2,4,8,8], index: 6, kind: output, shape index: {1}]  }
   0x1   :  { %v24_v0 = vld [vmem:[%s2485_s0] sm:$0xff]  ;;  %v25_v1 = vld [vmem:[%s2485_s0 + $0x8] sm:$0xff] }
   0x2   :  { %13 = vsyncpa [#allocation5], 0  ;;  %v27_v2 = vsel %vm26_vm0, %v24_v0, 0.0  ;;  %v30_v3 = vsel %vm26_vm0, %v25_v1, 0.0  ;;  %v73_v14 = vld [vmem:[%s2486_s1 + $0x8] sm:$0xff]  ;;  %v75_v15 = vld [vmem:[%s2486_s1 + $0x18] sm:$0xff] }
   0x3   :  { %28 = vadd.xlane.f32.xlu0 %v27_v2  ;;  %v72_v16 = vld [vmem:[%s2486_s1] sm:$0xff]  ;;  %v2056_v17 = vpack.c.bf16 %v75_v15, %v73_v14  ;;  %v74_v18 = vld [vmem:[%s2486_s1 + $0x10] sm:$0xff]  ;;  %v77_v19 = vld [vmem:[%s2486_s1 + $0x28] sm:$0xff]  ;;  %v2183_v21 = vmov 0.0   ;;  %vm2184_vm1 = vmmov 0   ;;  %vm176_vm2 = vcmask 130048  }
   0x4   :  { %v79_v20 = vld [vmem:[%s2486_s1 + $0x38] sm:$0xff]  ;;  %150 = vmatprep.mubr.f32.mxu0 %v2183_v21  ;;  %1948 = vmatprep.subr.mxu1 %v2183_v21  ;;  %v2058_v22 = vpack.c.bf16 %v74_v18, %v72_v16  ;;  %v76_v24 = vld [vmem:[%s2486_s1 + $0x20] sm:$0xff]  ;;  %v78_v25 = vld [vmem:[%s2486_s1 + $0x30] sm:$0xff]  ;;  %vm330_vm3 = vcmask 64512   ;;  %s2187_s19 = smov 48   ;;  %s2188_s20 = smov 32  }
   0x5   :  { %v2060_v23 = vpack.c.bf16 %v79_v20, %v77_v19  ;;  %2057 = vmatprep.subr.bf16.mxu0 %v2056_v17  ;;  %v2062_v26 = vpack.c.bf16 %v78_v25, %v76_v24  ;;  %v1864_v34 = vld [vmem:[%s2488_s3] ss:$0 sm:$0xff]  ;;  %1950 = vmatprep.mubr.msk.f32.mxu1 %vm2184_vm1, %v2183_v21  ;;  %s2185_s3 = smov 64   ;;  %s2189_s21 = smov 96  }
   0x6   :  { %2059 = vmatpush1.bf16.msra.mxu0 %v2058_v22  ;;  %v1865_v36 = vld [vmem:[%s2489_s4] ss:$0 sm:$0xff]  ;;  %s2186_s4 = smov 112   ;;  %s2190_s22 = smov 16  }
   0x7   :  { %31 = vadd.xlane.f32.xlu0 %v30_v3  ;;  %2061 = vmatprep.subr.bf16.mxu0 %v2060_v23  ;;  %s2191_s23 = smov 80   ;;  %s2192_s15 = smov [#allocation4]  }
   0x8   :  { %s1849_s16 = sshll.u32 %s2192_s15, 4  ;;  %s1850_s16 = int_to_ptr.vmem [resolvable:$true] %s1849_s16 }
   0x9   :  { %s2135_s17 = scalar_lea.vmem %s1850_s16, 1024  ;;  %p2140_p1 = scmp.lt.s32.totalorder %s1850_s16, %s1850_s16 }
   0xa   :  { %2063 = vmatpush1.bf16.msra.mxu0 %v2062_v26  ;;  %p2136_p0 = scmp.ne.s32.totalorder %s1850_s16, %s2135_s17  ;;  %p2141_p2 = scmp.lt.s32.totalorder %s2135_s17, %s2135_s17 }
   0xb   :  { %1963 = vmatprep.subr.mxu0 %v2183_v21 }
   0xc   :  { %p2142_p3 = por %p2141_p2, %p2140_p1 }
   0xe   :  { %p2143_p4 = pnand %p2142_p3, %p2136_p0 }
  0x90   :  { %v29_v4 = vpop.xlane.xlu0 %28 }
  0x91   :  { %v34_v5 = vmul.f32 0.03125, %v29_v4 }
  0x93   :  { %v36_v6 = vsub.f32 %v24_v0, %v34_v5 }
  0x94   :  { %v32_v7 = vpop.xlane.xlu0 %31 }
  0x95   :  { %v35_v8 = vmul.f32 0.03125, %v32_v7  ;;  %v38_v9 = vmul.f32 %v36_v6, %v36_v6 }
  0x97   :  { %v37_v10 = vsub.f32 %v25_v1, %v35_v8  ;;  %v40_v11 = vsel %vm26_vm0, %v38_v9, 0.0 }
  0x98   :  { %41 = vadd.xlane.f32.xlu1 %v40_v11 }
  0x99   :  { %v39_v12 = vmul.f32 %v37_v10, %v37_v10 }
  0x9b   :  { %v43_v13 = vsel %vm26_vm0, %v39_v12, 0.0 }
  0x9c   :  { %44 = vadd.xlane.f32.xlu1 %v43_v13 }
 0x125   :  { %v42_v27 = vpop.xlane.xlu1 %41 }
 0x126   :  { %v46_v28 = vmul.f32 0.03125, %v42_v27 }
 0x128   :  { %v48_v29 = vadd.f32 1e-05, %v46_v28 }
 0x129   :  { %v45_v30 = vpop.xlane.xlu1 %44 }
 0x12a   :  { %2099 = vrsqrt.f32 %v48_v29  ;;  %v47_v31 = vmul.f32 0.03125, %v45_v30 }
 0x12c   :  { %v49_v32 = vadd.f32 1e-05, %v47_v31 }
 0x12e   :  { %2101 = vrsqrt.f32 %v49_v32 }
 0x134   :  { %v2100_v33 = vpop.eup %2099 }
 0x135   :  { %v52_v35 = vmul.f32 %v2100_v33, %v36_v6 }
 0x137   :  { %v61_v37 = vmul.f32 %v1864_v34, %v52_v35 }
 0x138   :  { %v2102_v38 = vpop.eup %2101 }
 0x139   :  { %v70_v39 = vadd.f32 %v1865_v36, %v61_v37  ;;  %v53_v40 = vmul.f32 %v2102_v38, %v37_v10 }
 0x13b   :  { %1866 = vmatmul.mubr.msk.f32.vlgmr.msra.gmra.mrb[0].mxu0 %vm26_vm0, %v70_v39  ;;  %v62_v41 = vmul.f32 %v1864_v34, %v53_v40 }
 0x13c   :  { %156 = vmatprep.mubr.f32.mxu0 %v2183_v21 }
 0x13d   :  { %v71_v42 = vadd.f32 %v1865_v36, %v62_v41 }
 0x13f   :  { %1867 = vmatmul.mubr.msk.f32.gmra.mrb[2].mxu0 %vm26_vm0, %v71_v42 }
 0x140   :  { %1965 = vmatprep.mubr.msk.f32.mxu0 %vm2184_vm1, %v2183_v21 }
 0x20e   :  { %v2281_v43 = vpop.f32.mrb[0].mxu0 }
 0x20f   :  { %174 = vrot.lane.b32.xlu0 %v2281_v43, %s2185_s3  ;;  %v2284_v44 = vpop.f32.mrb[1].mxu0  ;;  %v2295_v48 = vmul.f32 0.25, %v2281_v43 }
 0x212   :  { %v2286_v45 = vpop.f32.mrb[2].mxu0 }
 0x213   :  { %253 = vrot.lane.b32.xlu1 %v2286_v45, %s2185_s3  ;;  %v2289_v46 = vpop.f32.mrb[3].mxu0  ;;  %v2304_v50 = vmul.f32 0.25, %v2286_v45 }
 0x214   :  { %1964 = vmatpush3.msra.mxu0 %v2289_v46 }
 0x215   :  { %1973 = vmatprep.subr.mxu0 %v2183_v21 }
 0x281   :  { %v175_v47 = vpop.permute.xlu0 %174 }
 0x282   :  { %1949 = vmatpush3.xpose.msk.msra.mxu1 %vm176_vm2, %v175_v47 }
 0x283   :  { %1953 = vmatprep.subr.mxu1 %v2183_v21 }
 0x285   :  { %v254_v49 = vpop.permute.xlu1 %253  ;;  %1951 = vmatmul.mubr.msk.f32.vlgmr.msra.gmra.mrb[0].mxu1 %vm176_vm2, %v2295_v48 }
 0x286   :  { %1954 = vmatpush3.xpose.msk.msra.mxu1 %vm176_vm2, %v254_v49  ;;  %1955 = vmatprep.mubr.msk.f32.mxu1 %vm2184_vm1, %v2183_v21  ;;  %v165_v49 = vld [vmem:[%s2487_s2 + $0x10] sm:$0xff] }
 0x287   :  { %1958 = vmatprep.subr.mxu1 %v2183_v21 }
 0x289   :  { %1956 = vmatmul.mubr.msk.f32.vlgmr.msra.gmra.mrb[2].mxu1 %vm176_vm2, %v2304_v50 }
 0x28a   :  { %1959 = vmatpush3.msra.mxu1 %v2284_v44  ;;  %1960 = vmatprep.mubr.msk.f32.mxu1 %vm2184_vm1, %v2183_v21 }
 0x28b   :  { %1968 = vmatprep.subr.mxu1 %v2183_v21 }
 0x358   :  { %v248_v51 = vpop.f32.mrb[0].mxu1 }
 0x359   :  { %v1952_v52 = vpop.f32.mrb[1].mxu1  ;;  %v331_v56 = vsel %vm330_vm3, %v248_v51, -inf }
 0x35c   :  { %v326_v53 = vpop.f32.mrb[2].mxu1 }
 0x35d   :  { %v1957_v54 = vpop.f32.mrb[3].mxu1  ;;  %v334_v55 = vsel %vm330_vm3, %v326_v53, -inf }
 0x35e   :  { %335 = vmax.xlane.f32.xlu1 %v334_v55  ;;  %v164_v54 = vld [vmem:[%s2487_s2 + $0x8] sm:$0xff] }
 0x36f   :  { %579 = vrot.lane.b32.xlu1 %v2304_v50, %s2186_s4 }
 0x393   :  { %332 = vmax.xlane.f32.xlu1 %v331_v56 }
 0x3a4   :  { %501 = vrot.lane.b32.xlu1 %v2295_v48, %s2186_s4 }
 0x3eb   :  { %v336_v57 = vpop.xlane.xlu1 %335 }
 0x3ec   :  { %v338_v58 = vsub.f32 %v326_v53, %v336_v57  ;;  %v163_v53 = vld [vmem:[%s2487_s2] sm:$0xff] }
 0x3ed   :  { %v2068_v55 = vpack.c.bf16 %v164_v54, %v163_v53 }
 0x3ee   :  { %v341_v59 = vmul.f32 1.442695, %v338_v58 }
 0x3ef   :  { %v580_v62 = vpop.permute.xlu1 %579 }
 0x3f0   :  { %2103 = vpow2.f32 %v341_v59 }
 0x3fa   :  { %v2104_v60 = vpop.eup %2103 }
 0x3fb   :  { %v346_v61 = vsel %vm330_vm3, %v2104_v60, 0.0 }
 0x3fc   :  { %347 = vadd.xlane.f32.xlu0 %v346_v61 }
 0x412   :  { %581 = vrot.lane.b32.xlu0 %v2286_v45, %s2187_s19 }
 0x420   :  { %v333_v63 = vpop.xlane.xlu1 %332 }
 0x421   :  { %v337_v0 = vsub.f32 %v248_v51, %v333_v63  ;;  %v166_v51 = vld [vmem:[%s2487_s2 + $0x18] sm:$0xff] }
 0x422   :  { %v2064_v52 = vpack.c.bf16 %v166_v51, %v165_v49 }
 0x423   :  { %v339_v1 = vmul.f32 1.442695, %v337_v0 }
 0x424   :  { %v502_v12 = vpop.permute.xlu1 %501 }
 0x425   :  { %2105 = vpow2.f32 %v339_v1 }
 0x42f   :  { %v2106_v2 = vpop.eup %2105 }
 0x430   :  { %v343_v3 = vsel %vm330_vm3, %v2106_v2, 0.0 }
 0x431   :  { %344 = vadd.xlane.f32.xlu0 %v343_v3 }
 0x447   :  { %503 = vrot.lane.b32.xlu0 %v2281_v43, %s2187_s19 }
 0x489   :  { %v348_v4 = vpop.xlane.xlu0 %347 }
 0x48a   :  { %2107 = vrcp.f32 %v348_v4 }
 0x48d   :  { %v582_v7 = vpop.permute.xlu0 %581 }
 0x494   :  { %v2108_v5 = vpop.eup %2107 }
 0x495   :  { %v352_v6 = vmul.f32 %v2108_v5, %v2104_v60 }
 0x497   :  { %354 = vst.msk [vmem:[#allocation4 + $0x20] sm:$0xff] %vm330_vm3, %v352_v6  ;;  %1966 = vmatmul.mubr.msk.f32.vlgmr.msra.gmra.mrb[4].mxu0 %vm330_vm3, %v352_v6 }
 0x498   :  { %1974 = vmatpush3.xpose.msk.msra.mxu0 %vm176_vm2, %v582_v7  ;;  %1975 = vmatprep.mubr.msk.f32.mxu0 %vm2184_vm1, %v2183_v21 }
 0x499   :  { %1983 = vmatprep.subr.mxu0 %v2183_v21 }
 0x49b   :  { %1976 = vmatmul.mubr.msk.f32.vlgmr.msra.gmra.mrb[6].mxu0 %vm176_vm2, %v580_v62 }
 0x49c   :  { %1985 = vmatprep.mubr.msk.f32.mxu0 %vm2184_vm1, %v2183_v21 }
 0x4be   :  { %v345_v8 = vpop.xlane.xlu0 %344 }
 0x4bf   :  { %2109 = vrcp.f32 %v345_v8 }
 0x4c2   :  { %v504_v11 = vpop.permute.xlu0 %503 }
 0x4c9   :  { %v2110_v9 = vpop.eup %2109 }
 0x4ca   :  { %v351_v10 = vmul.f32 %v2110_v9, %v2106_v2 }
 0x4cc   :  { %353 = vst.msk [vmem:[#allocation4] sm:$0xff] %vm330_vm3, %v351_v10  ;;  %1961 = vmatmul.mubr.msk.f32.vlgmr.msra.gmra.mrb[4].mxu1 %vm330_vm3, %v351_v10 }
 0x4cd   :  { %1969 = vmatpush3.xpose.msk.msra.mxu1 %vm176_vm2, %v504_v11  ;;  %1970 = vmatprep.mubr.msk.f32.mxu1 %vm2184_vm1, %v2183_v21 }
 0x4ce   :  { %1978 = vmatprep.subr.mxu1 %v2183_v21 }
 0x4d0   :  { %1971 = vmatmul.mubr.msk.f32.vlgmr.msra.gmra.mrb[6].mxu1 %vm176_vm2, %v502_v12 }
 0x4d1   :  { %1980 = vmatprep.mubr.msk.f32.mxu1 %vm2184_vm1, %v2183_v21 }
 0x56a   :  { %v2341_v13 = vpop.f32.mrb[4].mxu0 }
 0x56b   :  { %v1967_v14 = vpop.f32.mrb[5].mxu0 }
 0x56c   :  { %v168_v14 = vld [vmem:[%s2487_s2 + $0x28] sm:$0xff] }
 0x56e   :  { %v653_v15 = vpop.f32.mrb[6].mxu0 }
 0x56f   :  { %v1977_v16 = vpop.f32.mrb[7].mxu0  ;;  %v660_v17 = vsel %vm330_vm3, %v653_v15, -inf }
 0x570   :  { %661 = vmax.xlane.f32.xlu1 %v660_v17 }
 0x581   :  { %1000 = vrot.lane.b32.xlu1 %v2281_v43, %s2188_s20 }
 0x585   :  { %998 = vrot.lane.b32.xlu1 %v2295_v48, %s2189_s21 }
 0x589   :  { %1078 = vrot.lane.b32.xlu1 %v2286_v45, %s2188_s20 }
 0x59f   :  { %v2348_v18 = vpop.f32.mrb[4].mxu1 }
 0x5a0   :  { %v1962_v19 = vpop.f32.mrb[5].mxu1 }
 0x5a3   :  { %v575_v20 = vpop.f32.mrb[6].mxu1 }
 0x5a4   :  { %v1972_v22 = vpop.f32.mrb[7].mxu1  ;;  %v657_v23 = vsel %vm330_vm3, %v575_v20, -inf }
 0x5ad   :  { %658 = vmax.xlane.f32.xlu1 %v657_v23 }
 0x5fd   :  { %v662_v24 = vpop.xlane.xlu1 %661 }
 0x5fe   :  { %v664_v25 = vsub.f32 %v653_v15, %v662_v24 }
 0x600   :  { %v667_v26 = vmul.f32 1.442695, %v664_v25 }
 0x601   :  { %v1001_v29 = vpop.permute.xlu1 %1000 }
 0x602   :  { %2111 = vpow2.f32 %v667_v26 }
 0x605   :  { %v999_v30 = vpop.permute.xlu1 %998 }
 0x609   :  { %v1079_v31 = vpop.permute.xlu1 %1078 }
 0x60c   :  { %v2112_v27 = vpop.eup %2111 }
 0x60d   :  { %v672_v28 = vsel %vm330_vm3, %v2112_v27, 0.0 }
 0x60e   :  { %673 = vadd.xlane.f32.xlu0 %v672_v28 }
 0x624   :  { %760 = vrot.lane.b32.xlu0 %v2289_v46, %s2186_s4 }
 0x628   :  { %1076 = vrot.lane.b32.xlu0 %v2304_v50, %s2189_s21 }
 0x63a   :  { %v659_v32 = vpop.xlane.xlu1 %658 }
 0x63b   :  { %v663_v33 = vsub.f32 %v575_v20, %v659_v32 }
 0x63d   :  { %v665_v34 = vmul.f32 1.442695, %v663_v33 }
 0x63f   :  { %2113 = vpow2.f32 %v665_v34 }
 0x649   :  { %v2114_v35 = vpop.eup %2113 }
 0x64a   :  { %v669_v36 = vsel %vm330_vm3, %v2114_v35, 0.0 }
 0x64b   :  { %670 = vadd.xlane.f32.xlu0 %v669_v36 }
 0x661   :  { %683 = vrot.lane.b32.xlu0 %v2284_v44, %s2186_s4 }
 0x665   :  { %1255 = vrot.lane.b32.xlu0 %v2289_v46, %s2189_s21 }
 0x669   :  { %1416 = vrot.lane.b32.xlu0 %v2281_v43, %s2190_s22 }
 0x66d   :  { %1494 = vrot.lane.b32.xlu0 %v2286_v45, %s2190_s22 }
 0x671   :  { %1414 = vrot.lane.b32.xlu0 %v2295_v48, %s2191_s23 }
 0x69b   :  { %v674_v37 = vpop.xlane.xlu0 %673 }
 0x69c   :  { %2115 = vrcp.f32 %v674_v37 }
 0x69f   :  { %v761_v38 = vpop.permute.xlu0 %760 }
 0x6a0   :  { %1984 = vmatpush3.msra.mxu0 %v761_v38 }
 0x6a1   :  { %2002 = vmatprep.subr.mxu0 %v2183_v21 }
 0x6a3   :  { %v1077_v41 = vpop.permute.xlu0 %1076 }
 0x6a6   :  { %v2116_v39 = vpop.eup %2115 }
 0x6a7   :  { %v678_v40 = vmul.f32 %v2116_v39, %v2112_v27 }
 0x6a9   :  { %681 = vst.msk [vmem:[#allocation4 + $0x28] sm:$0xff] %vm330_vm3, %v678_v40  ;;  %1986 = vmatmul.mubr.msk.f32.vlgmr.msra.gmra.mrb[8].mxu0 %vm330_vm3, %v678_v40 }
 0x6aa   :  { %2003 = vmatpush3.xpose.msk.msra.mxu0 %vm176_vm2, %v1001_v29  ;;  %2004 = vmatprep.mubr.msk.f32.mxu0 %vm2184_vm1, %v2183_v21 }
 0x6ab   :  { %2007 = vmatprep.subr.mxu0 %v2183_v21 }
 0x6ad   :  { %2005 = vmatmul.mubr.msk.f32.vlgmr.msra.gmra.mrb[10].mxu0 %vm176_vm2, %v999_v30 }
 0x6ae   :  { %2008 = vmatpush3.xpose.msk.msra.mxu0 %vm176_vm2, %v1079_v31  ;;  %2009 = vmatprep.mubr.msk.f32.mxu0 %vm2184_vm1, %v2183_v21 }
 0x6af   :  { %2017 = vmatprep.subr.mxu0 %v2183_v21 }
 0x6b1   :  { %2010 = vmatmul.mubr.msk.f32.vlgmr.msra.gmra.mrb[12].mxu0 %vm176_vm2, %v1077_v41 }
 0x6b2   :  { %2019 = vmatprep.mubr.msk.f32.mxu0 %vm2184_vm1, %v2183_v21 }
 0x6d8   :  { %v671_v42 = vpop.xlane.xlu0 %670 }
 0x6d9   :  { %2117 = vrcp.f32 %v671_v42 }
 0x6dc   :  { %v684_v43 = vpop.permute.xlu0 %683 }
 0x6dd   :  { %1979 = vmatpush3.msra.mxu1 %v684_v43 }
 0x6de   :  { %2065 = vmatprep.subr.bf16.mxu1 %v2064_v52 }
 0x6e0   :  { %v1256_v45 = vpop.permute.xlu0 %1255 }
 0x6e1   :  { %2018 = vmatpush3.msra.mxu0 %v1256_v45 }
 0x6e2   :  { %2029 = vmatprep.subr.mxu0 %v2183_v21 }
 0x6e3   :  { %v2118_v47 = vpop.eup %2117 }
 0x6e4   :  { %v677_v48 = vmul.f32 %v2118_v47, %v2114_v35 }
 0x6e6   :  { %680 = vst.msk [vmem:[#allocation4 + $0x8] sm:$0xff] %vm330_vm3, %v677_v48  ;;  %1981 = vmatmul.mubr.msk.f32.vlgmr.msra.gmra.mrb[8].mxu1 %vm330_vm3, %v677_v48 }
 0x6e7   :  { %2067 = vmatpush3.bf16.msra.mxu1 %v2064_v52 }
 0x6e8   :  { %2069 = vmatprep.subr.bf16.mxu1 %v2068_v55 }
 0x77c   :  { %v832_v56 = vpop.f32.mrb[8].mxu0 }
 0x77d   :  { %v1987_v57 = vpop.f32.mrb[9].mxu0 }
 0x780   :  { %v1072_v58 = vpop.f32.mrb[10].mxu0 }
 0x781   :  { %v2006_v59 = vpop.f32.mrb[11].mxu0  ;;  %v1154_v60 = vsel %vm330_vm3, %v1072_v58, -inf }
 0x782   :  { %1155 = vmax.xlane.f32.xlu1 %v1154_v60 }
 0x784   :  { %v1150_v61 = vpop.f32.mrb[12].mxu0 }
 0x785   :  { %v2011_v62 = vpop.f32.mrb[13].mxu0  ;;  %v1157_v63 = vsel %vm330_vm3, %v1150_v61, -inf }
 0x786   :  { %1158 = vmax.xlane.f32.xlu1 %v1157_v63 }
 0x7b9   :  { %v755_v0 = vpop.f32.mrb[8].mxu1 }
 0x7ba   :  { %v1982_v1 = vpop.f32.mrb[9].mxu1  ;;  %1992 = vmatprep.mubr.msk.f32.mxu1 %vm176_vm2, %v755_v0 }
 0x7bb   :  { %1993 = vmatmul.mubr.msk.f32.vlgmr.msra.gmra.mrb[10].mxu1 %vm176_vm2, %v832_v56 }
 0x7bc   :  { %1999 = vmatprep.mubr.msk.f32.mxu1 %vm176_vm2, %v2348_v18  ;;  %2071 = vmatpush3.bf16.msra.mxu1 %v2068_v55  ;;  %v1417_v18 = vpop.permute.xlu0 %1416  ;;  %v169_v55 = vld [vmem:[%s2487_s2 + $0x30] sm:$0xff] }
 0x7bd   :  { %2012 = vmatprep.subr.mxu1 %v2183_v21 }
 0x7c0   :  { %v1495_v22 = vpop.permute.xlu0 %1494 }
 0x7c3   :  { %2000 = vmatmul.mubr.msk.f32.vlgmr.msra.gmra.mrb[10].mxu1 %vm176_vm2, %v2341_v13  ;;  %v167_v13 = vld [vmem:[%s2487_s2 + $0x20] sm:$0xff] }
 0x7c4   :  { %2014 = vmatprep.mubr.msk.f32.mxu1 %vm2184_vm1, %v2183_v21  ;;  %v2072_v16 = vpack.c.bf16 %v168_v14, %v167_v13  ;;  %v1415_v24 = vpop.permute.xlu0 %1414 }
 0x80f   :  { %v1156_v2 = vpop.xlane.xlu1 %1155 }
 0x810   :  { %v1160_v3 = vsub.f32 %v1072_v58, %v1156_v2 }
 0x812   :  { %v1162_v4 = vmul.f32 1.442695, %v1160_v3 }
 0x813   :  { %v1159_v5 = vpop.xlane.xlu1 %1158 }
 0x814   :  { %2119 = vpow2.f32 %v1162_v4  ;;  %v1161_v6 = vsub.f32 %v1150_v61, %v1159_v5 }
 0x816   :  { %v1164_v7 = vmul.f32 1.442695, %v1161_v6 }
 0x818   :  { %2121 = vpow2.f32 %v1164_v7 }
 0x81e   :  { %v2120_v8 = vpop.eup %2119 }
 0x81f   :  { %v1166_v9 = vsel %vm330_vm3, %v2120_v8, 0.0 }
 0x820   :  { %1167 = vadd.xlane.f32.xlu1 %v1166_v9 }
 0x822   :  { %v2122_v10 = vpop.eup %2121 }
 0x823   :  { %v1169_v11 = vsel %vm330_vm3, %v2122_v10, 0.0 }
 0x824   :  { %1170 = vadd.xlane.f32.xlu1 %v1169_v11 }
 0x835   :  { %1179 = vrot.lane.b32.xlu1 %v2284_v44, %s2189_s21 }
 0x839   :  { %1492 = vrot.lane.b32.xlu1 %v2304_v50, %s2191_s23 }
 0x8ad   :  { %v1168_v12 = vpop.xlane.xlu1 %1167 }
 0x8ae   :  { %2123 = vrcp.f32 %v1168_v12 }
 0x8b1   :  { %v1171_v15 = vpop.xlane.xlu1 %1170 }
 0x8b2   :  { %2125 = vrcp.f32 %v1171_v15 }
 0x8b5   :  { %v1180_v17 = vpop.permute.xlu1 %1179 }
 0x8b6   :  { %2013 = vmatpush3.msra.mxu1 %v1180_v17 }
 0x8b7   :  { %2073 = vmatprep.subr.bf16.mxu1 %v2072_v16 }
 0x8b8   :  { %v2124_v19 = vpop.eup %2123 }
 0x8b9   :  { %v1174_v20 = vmul.f32 %v2124_v19, %v2120_v8  ;;  %v1493_v29 = vpop.permute.xlu1 %1492 }
 0x8bb   :  { %1177 = vst.msk [vmem:[#allocation4 + $0x10] sm:$0xff] %vm330_vm3, %v1174_v20  ;;  %2015 = vmatmul.mubr.msk.f32.vlgmr.msra.gmra.mrb[12].mxu1 %vm330_vm3, %v1174_v20 }
 0x8bc   :  { %v2126_v50 = vpop.eup %2125  ;;  %2075 = vmatpush3.bf16.msra.mxu1 %v2072_v16 }
 0x8bd   :  { %v1175_v23 = vmul.f32 %v2126_v50, %v2122_v10  ;;  %2034 = vmatprep.subr.mxu1 %v2183_v21 }
 0x8bf   :  { %1178 = vst.msk [vmem:[#allocation4 + $0x30] sm:$0xff] %vm330_vm3, %v1175_v23  ;;  %2020 = vmatmul.mubr.msk.f32.vlgmr.msra.gmra.mrb[14].mxu0 %vm330_vm3, %v1175_v23 }
 0x8c0   :  { %2030 = vmatpush3.xpose.msk.msra.mxu0 %vm176_vm2, %v1417_v18  ;;  %2031 = vmatprep.mubr.msk.f32.mxu0 %vm2184_vm1, %v2183_v21 }
 0x8c1   :  { %2039 = vmatprep.subr.mxu0 %v2183_v21 }
 0x8c3   :  { %2032 = vmatmul.mubr.msk.f32.vlgmr.msra.gmra.mrb[16].mxu0 %vm176_vm2, %v1415_v24 }
 0x8c4   :  { %2041 = vmatprep.mubr.msk.f32.mxu0 %vm2184_vm1, %v2183_v21 }
 0x98e   :  { %v1251_v25 = vpop.f32.mrb[12].mxu1 }
 0x98f   :  { %v2016_v26 = vpop.f32.mrb[13].mxu1  ;;  %2026 = vmatprep.mubr.msk.f32.mxu1 %vm176_vm2, %v1251_v25 }
 0x992   :  { %v1327_v27 = vpop.f32.mrb[14].mxu0 }
 0x993   :  { %v2021_v28 = vpop.f32.mrb[15].mxu0  ;;  %2027 = vmatmul.mubr.msk.f32.vlgmr.msra.gmra.mrb[10].mxu1 %vm176_vm2, %v1327_v27 }
 0x994   :  { %2035 = vmatpush3.xpose.msk.msra.mxu1 %vm176_vm2, %v1495_v22  ;;  %2036 = vmatprep.mubr.msk.f32.mxu1 %vm2184_vm1, %v2183_v21 }
 0x995   :  { %2044 = vmatprep.subr.mxu1 %v2183_v21 }
 0x996   :  { %v1488_v30 = vpop.f32.mrb[16].mxu0 }
 0x997   :  { %v2033_v31 = vpop.f32.mrb[17].mxu0  ;;  %2037 = vmatmul.mubr.msk.f32.vlgmr.msra.gmra.mrb[14].mxu1 %vm176_vm2, %v1493_v29  ;;  %v1570_v32 = vsel %vm330_vm3, %v1488_v30, -inf }
 0x998   :  { %1571 = vmax.xlane.f32.xlu0 %v1570_v32  ;;  %2046 = vmatprep.mubr.msk.f32.mxu1 %vm2184_vm1, %v2183_v21 }
 0xa25   :  { %v1572_v33 = vpop.xlane.xlu0 %1571 }
 0xa26   :  { %v1576_v34 = vsub.f32 %v1488_v30, %v1572_v33 }
 0xa28   :  { %v1578_v35 = vmul.f32 1.442695, %v1576_v34 }
 0xa2a   :  { %2127 = vpow2.f32 %v1578_v35 }
 0xa34   :  { %v2128_v36 = vpop.eup %2127 }
 0xa35   :  { %v1582_v37 = vsel %vm330_vm3, %v2128_v36, 0.0 }
 0xa36   :  { %1583 = vadd.xlane.f32.xlu0 %v1582_v37 }
 0xa6a   :  { %v1566_v38 = vpop.f32.mrb[14].mxu1 }
 0xa6b   :  { %v2038_v39 = vpop.f32.mrb[15].mxu1  ;;  %v1573_v40 = vsel %vm330_vm3, %v1566_v38, -inf }
 0xa6c   :  { %1574 = vmax.xlane.f32.xlu1 %v1573_v40 }
 0xa7d   :  { %1671 = vrot.lane.b32.xlu1 %v2289_v46, %s2191_s23 }
 0xac3   :  { %v1584_v41 = vpop.xlane.xlu0 %1583 }
 0xac4   :  { %2129 = vrcp.f32 %v1584_v41 }
 0xace   :  { %v2130_v42 = vpop.eup %2129 }
 0xacf   :  { %v1590_v21 = vmul.f32 %v2130_v42, %v2128_v36 }
 0xad1   :  { %1593 = vst.msk [vmem:[#allocation4 + $0x18] sm:$0xff] %vm330_vm3, %v1590_v21 }
 0xaf9   :  { %v1575_v43 = vpop.xlane.xlu1 %1574 }
 0xafa   :  { %v1577_v45 = vsub.f32 %v1566_v38, %v1575_v43 }
 0xafc   :  { %v1580_v47 = vmul.f32 1.442695, %v1577_v45 }
 0xafd   :  { %v1672_v48 = vpop.permute.xlu1 %1671 }
 0xafe   :  { %2131 = vpow2.f32 %v1580_v47  ;;  %2045 = vmatpush3.msra.mxu1 %v1672_v48 }
 0xb08   :  { %v2132_v49 = vpop.eup %2131 }
 0xb09   :  { %v1585_v51 = vsel %vm330_vm3, %v2132_v49, 0.0 }
 0xb0a   :  { %1586 = vadd.xlane.f32.xlu0 %v1585_v51 }
 0xb20   :  { %1595 = vrot.lane.b32.xlu0 %v2284_v44, %s2191_s23  ;;  %v170_v44 = vld [vmem:[%s2487_s2 + $0x38] sm:$0xff] }
 0xb21   :  { %v2076_v56 = vpack.c.bf16 %v170_v44, %v169_v55 }
 0xb23   :  { %2077 = vmatprep.subr.bf16.mxu1 %v2076_v56 }
 0xb97   :  { %v1587_v46 = vpop.xlane.xlu0 %1586 }
 0xb98   :  { %2133 = vrcp.f32 %v1587_v46 }
 0xb9b   :  { %v1596_v52 = vpop.permute.xlu0 %1595 }
 0xb9c   :  { %2040 = vmatpush3.msra.mxu0 %v1596_v52 }
 0xb9d   :  { %2042 = vmatmul.mubr.msk.f32.vlgmr.msra.gmra.mrb[18].mxu0 %vm330_vm3, %v1590_v21 }
 0xba2   :  { %v2134_v53 = vpop.eup %2133 }
 0xba3   :  { %v1591_v54 = vmul.f32 %v2134_v53, %v2132_v49 }
 0xba5   :  { %1594 = vst.msk [vmem:[#allocation4 + $0x38] sm:$0xff] %vm330_vm3, %v1591_v54  ;;  %2047 = vmatmul.mubr.msk.f32.vlgmr.msra.gmra.mrb[16].mxu1 %vm330_vm3, %v1591_v54 }
 0xba6   :  { %2079 = vmatpush3.bf16.msra.mxu1 %v2076_v56 }
 0xc70   :  { %v1667_v57 = vpop.f32.mrb[18].mxu0 }
 0xc71   :  { %v2043_v58 = vpop.f32.mrb[19].mxu0  ;;  %2053 = vmatprep.mubr.msk.f32.mxu1 %vm176_vm2, %v1667_v57 }
 0xc78   :  { %v1743_v59 = vpop.f32.mrb[16].mxu1 }
 0xc79   :  { %v2048_v60 = vpop.f32.mrb[17].mxu1  ;;  %2054 = vmatmul.mubr.msk.f32.vlgmr.msra.gmra.mrb[10].mxu1 %vm176_vm2, %v1743_v59 }
 0xc7a   :  { %2146 = shalt.err (!%p2143_p4)
}
 0xc7b   :  { %s2147_s18 = scalar_lea.hbm %s2491_s6, 1024 }
 0xc7c   :  { %p2148_p5 = scmp.ne.s32.totalorder %s2491_s6, %s2147_s18  ;;  %p2151_p6 = scmp.lt.u32.totalorder %s2147_s18, %s2491_s6 }
 0xc7e   :  { %p2153_p7 = pnand %p2151_p6, %p2148_p5 }
 0xc80   :  { %2156 = shalt.err (!%p2153_p7)
}
 0xc81   :  { %s2193_s21 = smov 128   ;;  %s2194_s22 = smov 8  }
 0xc82   :  { %1855 = dma.vmem_to_hbm [thread:$0]  %s1850_s16, 1024, %s2491_s6, [#allocation5], %s2193_s21, %s2193_s21, %s2194_s22  }
 0xc83   :  { %s2195_s0 = smov [#allocation2]  }
 0xc84   :  { %s1837_s25 = sshll.u32 %s2195_s0, 4  ;;  %s1838_s25 = int_to_ptr.vmem [resolvable:$true] %s1837_s25 }
 0xc85   :  { %s2157_s26 = scalar_lea.vmem %s1838_s25, 256  ;;  %p2162_p9 = scmp.lt.s32.totalorder %s1838_s25, %s1838_s25 }
 0xc86   :  { %p2158_p8 = scmp.ne.s32.totalorder %s1838_s25, %s2157_s26  ;;  %p2163_p10 = scmp.lt.s32.totalorder %s2157_s26, %s2157_s26 }
 0xc88   :  { %p2164_p11 = por %p2163_p10, %p2162_p9 }
 0xc8a   :  { %p2165_p12 = pnand %p2164_p11, %p2158_p8 }
 0xd4c   :  { %v2055_v61 = vpop.f32.mrb[10].mxu1 }
 0xd4d   :  { %1831 = vst.msk [vmem:[#allocation2 + $0x8] sm:$0xff] %vm26_vm0, %v2055_v61  ;;  %v1819_v62 = vpop.f32.mrb[11].mxu1 }
 0xd4e   :  { %1830 = vst.msk [vmem:[#allocation2] sm:$0xff] %vm26_vm0, %v1819_v62 }
 0xd4f   :  { %2168 = shalt.err (!%p2165_p12)
}
 0xd50   :  { %s2169_s6 = scalar_lea.hbm %s2490_s5, 256 }
 0xd51   :  { %p2170_p13 = scmp.ne.s32.totalorder %s2490_s5, %s2169_s6  ;;  %p2173_p0 = scmp.lt.u32.totalorder %s2169_s6, %s2490_s5 }
 0xd53   :  { %p2175_p1 = pnand %p2173_p0, %p2170_p13 }
 0xd55   :  { %2178 = shalt.err (!%p2175_p1)
}
 0xd56   :  { %1843 = dma.vmem_to_hbm [thread:$0]  %s1838_s25, 256, %s2490_s5, [#allocation3], %s2193_s21, %s2193_s21, %s2194_s22  }
 0xd57   :  { %2179 = dma.done.wait [#allocation3], 256  }
 0xd58   :  { %2180 = vsyncadd [#allocation3], 4294967040 }
 0xd59   :  { %2181 = dma.done.wait [#allocation5], 1024  }
 0xd5a   :  { %2182 = vsyncadd [#allocation5], 4294966272 }
 0xd5b   :  { %1862 = vsyncpa [#allocation3], 1 }
 0xd5c   :  { %1863 = vsyncpa [#allocation5], 1 }

</bundles_post_ra>
